<compile_context>
chip_gen: v7x
topology: tpu7x:2x2x1
jax: 0.10.0
libtpu: 0.0.40
codegen_flags: <defaults>
</compile_context>

<pallas_src>
import jax
import jax.numpy as jnp
from jax.experimental import pallas as pl
from jax.experimental.pallas import tpu as pltpu


def _copy_kernel(x_ref, o_ref):
    # Identity copy of the current (row_tile, lane) block.
    o_ref[...] = x_ref[...]


def _sublane_pack(dtype) -> int:
    # Rows per fully-packed vreg: 8 for 32-bit, 16 for 16-bit, 32 for 8-bit.
    bits = jnp.dtype(dtype).itemsize * 8
    return max(8, 256 // bits)


def _pick_lane(total_padded: int) -> int:
    """Largest lane width (multiple of 128) dividing the padded element count."""
    for lane in (4096, 2048, 1024, 512, 256, 128):
        if total_padded % lane == 0:
            return lane
    raise AssertionError("padded numel must be a multiple of 128")


def _pick_row_tile(rows_slab: int, lane: int, itemsize: int, sub: int,
                   target_bytes: int, *, min_steps: int = 8,
                   single_block_bytes: int = 512 * 1024) -> int:
    """Fixed sublane-packed row tile (no divisor requirement; grid uses cdiv).

    - Tiny slabs (< single_block_bytes, or fewer rows than one packed vreg)
      use a single full-extent block.
    - Larger slabs get a tile capped by both the VMEM byte target and a
      minimum number of grid steps (pipelining + megacore sharding), rounded
      down to a multiple of the sublane pack so every block is (8,128)-legal
      and fully packed; the final partial block is handled by Pallas."""
    slab_bytes = rows_slab * lane * itemsize
    if rows_slab <= sub or slab_bytes <= single_block_bytes:
        return rows_slab  # single full-extent block
    cap = max(sub, target_bytes // (lane * itemsize))
    per_step = pl.cdiv(rows_slab, min_steps)
    tile = min(cap, per_step, rows_slab)
    tile = max(sub, (tile // sub) * sub)
    return min(tile, rows_slab)


def view_forward(x: jax.Array, columns: int, *,
                 target_block_bytes: int = 8 * 1024 * 1024,
                 vmem_limit_bytes: int = 48 * 1024 * 1024) -> jax.Array:
    """Equivalent of PyTorch `x.view(-1, columns)`.

    The reshape itself is metadata-only (`jnp.reshape`); the Pallas kernel
    streams the data through VMEM in large lane-dense tiles."""
    total = x.size
    assert total % columns == 0, "input numel must be divisible by columns"
    rows = total // columns
    itemsize = jnp.dtype(x.dtype).itemsize

    # Flatten (row-major, same order as torch .view) and pad to a multiple of
    # 128 lanes so every store is unmasked; the few padded elements of extra
    # DMA are negligible versus masked stores on every row.
    flat = jnp.ravel(x)
    pad = (-total) % 128
    if pad:
        flat = jnp.pad(flat, (0, pad))
    total_p = total + pad

    lane = _pick_lane(total_p)
    rows_slab = total_p // lane
    sub = _sublane_pack(x.dtype)
    row_tile = _pick_row_tile(rows_slab, lane, itemsize, sub, target_block_bytes)

    x_slab = jnp.reshape(flat, (rows_slab, lane))
    grid = (pl.cdiv(rows_slab, row_tile),)

    out_slab = pl.pallas_call(
        _copy_kernel,
        out_shape=jax.ShapeDtypeStruct((rows_slab, lane), x.dtype),
        grid_spec=pltpu.PrefetchScalarGridSpec(
            num_scalar_prefetch=0,
            grid=grid,
            in_specs=[pl.BlockSpec((row_tile, lane), lambda i: (i, 0))],
            out_specs=pl.BlockSpec((row_tile, lane), lambda i: (i, 0)),
        ),
        compiler_params=pltpu.CompilerParams(
            # Parallel grid axis -> v7x shards the copy across its 2 TCs
            # (>= 8 steps for any slab big enough to matter); no-op on
            # single-TC v5e/v6e.
            dimension_semantics=("parallel",),
            # 2 operands x 2 pipeline buffers x 8 MiB blocks = 32 MiB; 48 MiB
            # covers it with headroom, clears v5e's 16 MiB scoped default and
            # stays under v7x's 64 MiB physical VMEM per TC.
            vmem_limit_bytes=vmem_limit_bytes,
        ),
        # Pure bandwidth-bound copy: one HBM read + one HBM write.
        cost_estimate=pl.CostEstimate(
            flops=0,
            transcendentals=0,
            bytes_accessed=2 * total_p * itemsize,
        ),
    )(x_slab)

    # Strip padding (no-op when pad == 0) and do the metadata reshape back to
    # the requested (-1, columns) view.
    out_flat = jnp.ravel(out_slab)
    if pad:
        out_flat = out_flat[:total]
    return jnp.reshape(out_flat, (rows, columns))


if __name__ == "__main__":
    # Small NCHW input consistent with an autoencoder-style use of View.
    key = jax.random.PRNGKey(0)
    B, C, H, W = 2, 4, 16, 16
    x = jax.random.normal(key, (B, C, H, W), dtype=jnp.float32)

    columns = C * H * W  # View(columns) -> output shape (B, C*H*W)

    # Pure-JAX reference (same semantics as torch .view), computed up front.
    ref = jnp.reshape(x, (-1, columns))

    out = view_forward(x, columns)
    out = jax.block_until_ready(out)

    assert out.shape == (B, columns)
    assert out.dtype == x.dtype
    assert bool(jnp.array_equal(out, ref))

    print("KERNEL_OK")
</pallas_src>

<mosaic_0001>
module attributes {stable_mosaic.version = 11 : i64} {
  func.func @_copy_kernel(%arg0: i32, %arg1: memref<1x2048xf32, #tpu.memory_space<vmem>>, %arg2: memref<1x2048xf32, #tpu.memory_space<vmem>>) attributes {dimension_semantics = [#tpu.dimension_semantics<parallel>], iteration_bounds = array<i64: 1>, scalar_prefetch = 0 : i64, scratch_operands = 0 : i64, tpu.core_type = #tpu.core_type<tc>, window_params = [{transform_indices = @transform_0, window_bounds = array<i64: 1, 2048>}, {transform_indices = @transform_1, window_bounds = array<i64: 1, 2048>}]} {
    %c0 = arith.constant 0 : index
    %c0_0 = arith.constant 0 : index
    %0 = vector.load %arg1[%c0, %c0_0] : memref<1x2048xf32, #tpu.memory_space<vmem>>, vector<1x2048xf32>
    %c0_1 = arith.constant 0 : index
    %c0_2 = arith.constant 0 : index
    %1 = vector.load %arg2[%c0_1, %c0_2] : memref<1x2048xf32, #tpu.memory_space<vmem>>, vector<1x2048xf32>
    tpu.vector_store %arg2[%c0_1, %c0_2], %0 {strides = array<i32>} : memref<1x2048xf32, #tpu.memory_space<vmem>>, vector<1x2048xf32>,
    return
  }
  func.func @transform_0(%arg0: i32) -> (i32, i32) {
    %c0_i32 = arith.constant 0 : i32
    %c0_i32_0 = arith.constant 0 : i32
    return %arg0, %c0_i32 : i32, i32
  }
  func.func @transform_1(%arg0: i32) -> (i32, i32) {
    %c0_i32 = arith.constant 0 : i32
    %c0_i32_0 = arith.constant 0 : i32
    return %arg0, %c0_i32 : i32, i32
  }
}

</mosaic_0001>

<bundles_post_ra>
// kernel: tpu_custom_call.1
= control target key start
LH: loop header
LB: loop body
LE: loop exit
PB: predicated region body
PF: predicated region fallthrough
CT: control target
= control target key end

     0   :  { %6 = vsyncpa [#allocation3], 0  ;;  %s126_s0 = inlined_call_operand.hbm [shape: f32[1,2048], index: 0, kind: input, shape index: {}]   ;;  %s127_s1 = inlined_call_operand.hbm [shape: f32[1,2048], index: 1, kind: output, shape index: {}]  }
   0x1   :  { %7 = vsyncpa [#allocation4], 0  ;;  %s90_s6 = smov [#allocation2]   ;;  %s42_s10 = scalar_lea.hbm %s126_s0, 256 }
   0x2   :  { %s14_s7 = sshll.u32 %s90_s6, 4  ;;  %p43_p0 = scmp.ne.s32.totalorder %s126_s0, %s42_s10  ;;  %s15_s7 = int_to_ptr.vmem [resolvable:$true] %s14_s7 }
   0x3   :  { %p46_p1 = scmp.lt.u32.totalorder %s42_s10, %s126_s0 }
   0x5   :  { %p48_p2 = pnand %p46_p1, %p43_p0 }
   0x7   :  { %51 = shalt.err (!%p48_p2)
}
   0x8   :  { %s52_s15 = scalar_lea.vmem %s15_s7, 256  ;;  %p57_p4 = scmp.lt.s32.totalorder %s15_s7, %s15_s7 }
   0x9   :  { %p53_p3 = scmp.ne.s32.totalorder %s15_s7, %s52_s15  ;;  %p58_p5 = scmp.lt.s32.totalorder %s52_s15, %s52_s15 }
   0xb   :  { %p59_p6 = por %p58_p5, %p57_p4 }
   0xd   :  { %p60_p7 = pnand %p59_p6, %p53_p3 }
   0xf   :  { %63 = shalt.err (!%p60_p7)
}
  0x10   :  { %17 = dma.hbm_to_vmem [thread:$0]  %s126_s0, 256, %s15_s7, [#allocation3]  }
  0x11   :  { %86 = dma.done.wait [#allocation3], 256  }
  0x12   :  { %87 = vsyncadd [#allocation3], 4294967040  ;;  %s91_s18 = smov [#allocation5]   ;;  %v21_v0 = vld [vmem:[#allocation2] sm:$0xff]  ;;  %v22_v1 = vld [vmem:[#allocation2 + $0x8] sm:$0xff] }
  0x13   :  { %s31_s19 = sshll.u32 %s91_s18, 4  ;;  %23 = vst [vmem:[#allocation5] sm:$0xff] %v21_v0  ;;  %24 = vst [vmem:[#allocation5 + $0x8] sm:$0xff] %v22_v1  ;;  %s32_s19 = int_to_ptr.vmem [resolvable:$true] %s31_s19 }
  0x14   :  { %s64_s20 = scalar_lea.vmem %s32_s19, 256  ;;  %p69_p9 = scmp.lt.s32.totalorder %s32_s19, %s32_s19 }
  0x15   :  { %p65_p8 = scmp.ne.s32.totalorder %s32_s19, %s64_s20  ;;  %p70_p10 = scmp.lt.s32.totalorder %s64_s20, %s64_s20 }
  0x17   :  { %p71_p11 = por %p70_p10, %p69_p9 }
  0x19   :  { %p72_p12 = pnand %p71_p11, %p65_p8 }
  0x1b   :  { %75 = shalt.err (!%p72_p12)
}
  0x1c   :  { %s76_s0 = scalar_lea.hbm %s127_s1, 256 }
  0x1d   :  { %p77_p13 = scmp.ne.s32.totalorder %s127_s1, %s76_s0  ;;  %p80_p0 = scmp.lt.u32.totalorder %s76_s0, %s127_s1 }
  0x1f   :  { %p82_p1 = pnand %p80_p0, %p77_p13 }
  0x21   :  { %85 = shalt.err (!%p82_p1)
}
  0x22   :  { %34 = dma.vmem_to_hbm [thread:$0]  %s32_s19, 256, %s127_s1, [#allocation4]  }
  0x23   :  { %88 = dma.done.wait [#allocation4], 256  }
  0x24   :  { %89 = vsyncadd [#allocation4], 4294967040 }
  0x25   :  { %38 = vsyncpa [#allocation3], 1 }
  0x26   :  { %39 = vsyncpa [#allocation4], 1 }

</bundles_post_ra>
